<compile_context>
chip_gen: v7x
topology: tpu7x:2x2x1
jax: 0.10.0
libtpu: 0.0.40
codegen_flags: <defaults>
</compile_context>

<pallas_src>
import functools

import jax
import jax.numpy as jnp
from jax.experimental import pallas as pl
from jax.experimental.pallas import tpu as pltpu

_LANE = 128          # vreg lane width: pad feature dims to this (lane-dense)
_MAX_TILE_B = 2048   # batch rows per grid step (amortizes per-step overhead)


def _round_up(n, m):
    return ((n + m - 1) // m) * m


def _fused_mlp_kernel(*refs, n_layers, compute_dtype):
    """One grid step: full MLP on a (TILE_B, 128k) activation tile.

    refs = (x_ref, w0, b0, w1, b1, ..., w_{L-1}, b_{L-1}, out_ref).
    x / weights / inter-layer activations are bf16 (MXU-native, half the
    load/store traffic); accumulation, bias add and the final sigmoid are f32.
    """
    x_ref = refs[0]
    out_ref = refs[1 + 2 * n_layers]
    h = x_ref[...]                                   # bf16 input tile
    for i in range(n_layers):
        w = refs[1 + 2 * i][...]                     # (Dp_in, Dp_out) bf16, VMEM-resident
        b = refs[2 + 2 * i][...]                     # (1, Dp_out) f32, broadcasts over rows
        acc = jnp.dot(h, w, preferred_element_type=jnp.float32) + b
        if i < n_layers - 1:
            h = jnp.maximum(acc, 0.0).astype(compute_dtype)  # VPU relu, bf16 spill
        else:
            h = jax.nn.sigmoid(acc)                  # EUP transcendental, f32
    out_ref[...] = h.astype(out_ref.dtype)


def pack_graph_embedding_params(params, compute_dtype=jnp.bfloat16):
    """One-time packing: lane-pad + bf16-cast weights, pad biases to (1, Dp)."""
    dims = [params[0][0].shape[0]] + [w.shape[1] for w, _ in params]
    dims_p = [_round_up(d, _LANE) for d in dims]
    layers = []
    for i, (w, b) in enumerate(params):
        w_p = jnp.pad(w, ((0, dims_p[i] - dims[i]),
                          (0, dims_p[i + 1] - dims[i + 1])))
        b_p = jnp.pad(b, (0, dims_p[i + 1] - dims[i + 1])).reshape(1, dims_p[i + 1])
        layers.append((w_p.astype(compute_dtype), b_p.astype(jnp.float32)))
    return {"layers": layers, "dims": dims, "dims_p": dims_p,
            "compute_dtype": compute_dtype}


def graph_embedding_forward(x, packed):
    """Forward pass: [Linear -> ReLU -> Dropout]* -> Linear -> Sigmoid, fused.

    Dropout is the identity in inference mode (nn.Dropout eval behavior).
    """
    # TODO(synk): training-mode dropout (random masking) not implemented; eval
    # semantics (identity) are reproduced exactly.
    layers = packed["layers"]
    dims, dims_p = packed["dims"], packed["dims_p"]
    compute_dtype = packed["compute_dtype"]
    n_layers = len(layers)

    B, d_in = x.shape
    assert d_in == dims[0]
    d_out, dp_out = dims[-1], dims_p[-1]

    # bf16 lane-padded input (exact: padded feature columns are zero).
    x_p = jnp.pad(x.astype(compute_dtype), ((0, 0), (0, dims_p[0] - d_in)))

    # Batch tiling: no rounding of B up to the tile; Pallas masks the tail block.
    tile_b = min(_MAX_TILE_B, _round_up(B, 8))
    num_steps = pl.cdiv(B, tile_b)
    grid = (num_steps,)

    in_specs = [pl.BlockSpec((tile_b, dims_p[0]), lambda i: (i, 0))]
    flat_inputs = [x_p]
    for w_p, b_p in layers:
        # Full-array blocks with constant index_map -> weights stay VMEM-resident.
        in_specs.append(pl.BlockSpec(w_p.shape, lambda i: (0, 0)))
        in_specs.append(pl.BlockSpec(b_p.shape, lambda i: (0, 0)))
        flat_inputs += [w_p, b_p]

    flops = 2 * B * sum(dims_p[i] * dims_p[i + 1] for i in range(n_layers))
    bytes_accessed = (x_p.size * x_p.dtype.itemsize + B * dp_out * 4
                      + sum(w.size * w.dtype.itemsize + b.size * 4
                            for w, b in layers))
    cost = pl.CostEstimate(flops=flops,
                           transcendentals=B * dp_out,
                           bytes_accessed=bytes_accessed)

    # Megacore: only core_parallel actually engages v7x's second TensorCore.
    try:
        device_kind = jax.devices()[0].device_kind.lower()
    except Exception:  # pragma: no cover
        device_kind = ""
    if "v7" in device_kind and num_steps >= 2:
        dim_sem = (pltpu.CORE_PARALLEL,)
    else:
        dim_sem = ("parallel",)

    kernel = functools.partial(_fused_mlp_kernel, n_layers=n_layers,
                               compute_dtype=compute_dtype)
    out_p = pl.pallas_call(
        kernel,
        out_shape=jax.ShapeDtypeStruct((B, dp_out), jnp.float32),
        grid=grid,
        in_specs=in_specs,
        out_specs=pl.BlockSpec((tile_b, dp_out), lambda i: (i, 0)),
        compiler_params=pltpu.CompilerParams(
            dimension_semantics=dim_sem,
            vmem_limit_bytes=32 * 1024 * 1024),
        cost_estimate=cost,
    )(*flat_inputs)
    return out_p[:, :d_out]


def init_graph_embedding_params(key, input_dim, hidden_layers):
    """Deterministic parameter init matching the PyTorch module's shapes."""
    dims = [input_dim] + list(hidden_layers) + [input_dim]
    params = []
    for i in range(len(dims) - 1):
        d_in, d_out = dims[i], dims[i + 1]
        key, kw, kb = jax.random.split(key, 3)
        bound = 1.0 / jnp.sqrt(d_in)  # PyTorch nn.Linear default init range
        w = jax.random.uniform(kw, (d_in, d_out), jnp.float32, -bound, bound)
        b = jax.random.uniform(kb, (d_out,), jnp.float32, -bound, bound)
        params.append((w, b))
    return params


def _reference_forward(x, params, compute_dtype=jnp.bfloat16):
    """Pure-JAX reference mirroring the kernel's numerics (bf16 MXU, f32 acc)."""
    h = x.astype(jnp.float32)
    n = len(params)
    for i, (w, b) in enumerate(params):
        acc = jnp.dot(h.astype(compute_dtype), w.astype(compute_dtype),
                      preferred_element_type=jnp.float32) + b.astype(jnp.float32)
        h = jnp.maximum(acc, 0.0) if i < n - 1 else jax.nn.sigmoid(acc)
    return h


if __name__ == "__main__":
    key = jax.random.PRNGKey(0)
    k_x, k_p, k_x2 = jax.random.split(key, 3)

    batch = 8
    input_dim = 32
    hidden_layers = [64, 32]
    dropout_rate = 0.1  # identity at inference time

    params = init_graph_embedding_params(k_p, input_dim, hidden_layers)
    packed = pack_graph_embedding_params(params)      # one-time pad + bf16 cast

    fwd = jax.jit(lambda xin: graph_embedding_forward(xin, packed))

    # Small single-tile case.
    x = jax.random.normal(k_x, (batch, input_dim), jnp.float32)
    out = jax.block_until_ready(fwd(x))
    ref = _reference_forward(x, params)
    assert out.shape == (batch, input_dim)
    assert bool(jnp.all(out >= 0.0)) and bool(jnp.all(out <= 1.0))
    assert bool(jnp.allclose(out, ref, atol=1e-2, rtol=1e-2))

    # Larger case (non-power-of-2 batch; exercises tile/partial-block path).
    x2 = jax.random.normal(k_x2, (600, input_dim), jnp.float32)
    out2 = jax.block_until_ready(fwd(x2))
    ref2 = _reference_forward(x2, params)
    assert out2.shape == (600, input_dim)
    assert bool(jnp.allclose(out2, ref2, atol=1e-2, rtol=1e-2))

    print("KERNEL_OK")
</pallas_src>

<mosaic_0001>
module attributes {stable_mosaic.version = 11 : i64} {
  func.func @_fused_mlp_kernel(%arg0: i32, %arg1: memref<8x128xbf16, #tpu.memory_space<vmem>>, %arg2: memref<128x128xbf16, #tpu.memory_space<vmem>>, %arg3: memref<1x128xf32, #tpu.memory_space<vmem>>, %arg4: memref<128x128xbf16, #tpu.memory_space<vmem>>, %arg5: memref<1x128xf32, #tpu.memory_space<vmem>>, %arg6: memref<128x128xbf16, #tpu.memory_space<vmem>>, %arg7: memref<1x128xf32, #tpu.memory_space<vmem>>, %arg8: memref<8x128xf32, #tpu.memory_space<vmem>>) attributes {dimension_semantics = [#tpu.dimension_semantics<parallel>], iteration_bounds = array<i64: 1>, scalar_prefetch = 0 : i64, scratch_operands = 0 : i64, tpu.core_type = #tpu.core_type<tc>, window_params = [{transform_indices = @transform_0, window_bounds = array<i64: 8, 128>}, {pipeline_mode = #tpu.pipeline_mode<synchronous>, transform_indices = @transform_1, window_bounds = array<i64: 128, 128>}, {pipeline_mode = #tpu.pipeline_mode<synchronous>, transform_indices = @transform_2, window_bounds = array<i64: 1, 128>}, {pipeline_mode = #tpu.pipeline_mode<synchronous>, transform_indices = @transform_3, window_bounds = array<i64: 128, 128>}, {pipeline_mode = #tpu.pipeline_mode<synchronous>, transform_indices = @transform_4, window_bounds = array<i64: 1, 128>}, {pipeline_mode = #tpu.pipeline_mode<synchronous>, transform_indices = @transform_5, window_bounds = array<i64: 128, 128>}, {pipeline_mode = #tpu.pipeline_mode<synchronous>, transform_indices = @transform_6, window_bounds = array<i64: 1, 128>}, {transform_indices = @transform_7, window_bounds = array<i64: 8, 128>}]} {
    %c0 = arith.constant 0 : index
    %c0_0 = arith.constant 0 : index
    %0 = vector.load %arg1[%c0, %c0_0] : memref<8x128xbf16, #tpu.memory_space<vmem>>, vector<8x128xbf16>
    %c0_1 = arith.constant 0 : index
    %c0_2 = arith.constant 0 : index
    %1 = vector.load %arg2[%c0_1, %c0_2] : memref<128x128xbf16, #tpu.memory_space<vmem>>, vector<128x128xbf16>
    %c0_3 = arith.constant 0 : index
    %c0_4 = arith.constant 0 : index
    %2 = vector.load %arg3[%c0_3, %c0_4] : memref<1x128xf32, #tpu.memory_space<vmem>>, vector<1x128xf32>
    %cst = arith.constant dense<0.000000e+00> : vector<8x128xf32>
    %3 = tpu.matmul %0, %1, %cst {dimension_numbers = #tpu.dot_dimension_numbers<[1], [0], [0], [1], [0, 0, 1, 1], [], []>} : vector<8x128xbf16>, vector<128x128xbf16>, vector<8x128xf32> -> vector<8x128xf32>
    %4 = vector.broadcast %2 : vector<1x128xf32> to vector<8x128xf32>
    %5 = arith.addf %3, %4 : vector<8x128xf32>
    %cst_5 = arith.constant 0.000000e+00 : f32
    %6 = vector.broadcast %cst_5 : f32 to vector<8x128xf32>
    %7 = arith.maximumf %5, %6 : vector<8x128xf32>
    %8 = arith.truncf %7 : vector<8x128xf32> to vector<8x128xbf16>
    %c0_6 = arith.constant 0 : index
    %c0_7 = arith.constant 0 : index
    %9 = vector.load %arg4[%c0_6, %c0_7] : memref<128x128xbf16, #tpu.memory_space<vmem>>, vector<128x128xbf16>
    %c0_8 = arith.constant 0 : index
    %c0_9 = arith.constant 0 : index
    %10 = vector.load %arg5[%c0_8, %c0_9] : memref<1x128xf32, #tpu.memory_space<vmem>>, vector<1x128xf32>
    %cst_10 = arith.constant dense<0.000000e+00> : vector<8x128xf32>
    %11 = tpu.matmul %8, %9, %cst_10 {dimension_numbers = #tpu.dot_dimension_numbers<[1], [0], [0], [1], [0, 0, 1, 1], [], []>} : vector<8x128xbf16>, vector<128x128xbf16>, vector<8x128xf32> -> vector<8x128xf32>
    %12 = vector.broadcast %10 : vector<1x128xf32> to vector<8x128xf32>
    %13 = arith.addf %11, %12 : vector<8x128xf32>
    %cst_11 = arith.constant 0.000000e+00 : f32
    %14 = vector.broadcast %cst_11 : f32 to vector<8x128xf32>
    %15 = arith.maximumf %13, %14 : vector<8x128xf32>
    %16 = arith.truncf %15 : vector<8x128xf32> to vector<8x128xbf16>
    %c0_12 = arith.constant 0 : index
    %c0_13 = arith.constant 0 : index
    %17 = vector.load %arg6[%c0_12, %c0_13] : memref<128x128xbf16, #tpu.memory_space<vmem>>, vector<128x128xbf16>
    %c0_14 = arith.constant 0 : index
    %c0_15 = arith.constant 0 : index
    %18 = vector.load %arg7[%c0_14, %c0_15] : memref<1x128xf32, #tpu.memory_space<vmem>>, vector<1x128xf32>
    %cst_16 = arith.constant dense<0.000000e+00> : vector<8x128xf32>
    %19 = tpu.matmul %16, %17, %cst_16 {dimension_numbers = #tpu.dot_dimension_numbers<[1], [0], [0], [1], [0, 0, 1, 1], [], []>} : vector<8x128xbf16>, vector<128x128xbf16>, vector<8x128xf32> -> vector<8x128xf32>
    %20 = vector.broadcast %18 : vector<1x128xf32> to vector<8x128xf32>
    %21 = arith.addf %19, %20 : vector<8x128xf32>
    %22 = arith.negf %21 : vector<8x128xf32>
    %23 = math.exp %22 : vector<8x128xf32>
    %cst_17 = arith.constant 1.000000e+00 : f32
    %24 = vector.broadcast %cst_17 : f32 to vector<8x128xf32>
    %25 = arith.addf %24, %23 : vector<8x128xf32>
    %26 = arith.divf %24, %25 : vector<8x128xf32>
    %c0_18 = arith.constant 0 : index
    %c0_19 = arith.constant 0 : index
    %27 = vector.load %arg8[%c0_18, %c0_19] : memref<8x128xf32, #tpu.memory_space<vmem>>, vector<8x128xf32>
    tpu.vector_store %arg8[%c0_18, %c0_19], %26 {strides = array<i32>} : memref<8x128xf32, #tpu.memory_space<vmem>>, vector<8x128xf32>,
    return
  }
  func.func @transform_0(%arg0: i32) -> (i32, i32) {
    %c0_i32 = arith.constant 0 : i32
    %c0_i32_0 = arith.constant 0 : i32
    return %arg0, %c0_i32 : i32, i32
  }
  func.func @transform_1(%arg0: i32) -> (i32, i32) {
    %c0_i32 = arith.constant 0 : i32
    %c0_i32_0 = arith.constant 0 : i32
    %c0_i32_1 = arith.constant 0 : i32
    return %c0_i32, %c0_i32_0 : i32, i32
  }
  func.func @transform_2(%arg0: i32) -> (i32, i32) {
    %c0_i32 = arith.constant 0 : i32
    %c0_i32_0 = arith.constant 0 : i32
    %c0_i32_1 = arith.constant 0 : i32
    return %c0_i32, %c0_i32_0 : i32, i32
  }
  func.func @transform_3(%arg0: i32) -> (i32, i32) {
    %c0_i32 = arith.constant 0 : i32
    %c0_i32_0 = arith.constant 0 : i32
    %c0_i32_1 = arith.constant 0 : i32
    return %c0_i32, %c0_i32_0 : i32, i32
  }
  func.func @transform_4(%arg0: i32) -> (i32, i32) {
    %c0_i32 = arith.constant 0 : i32
    %c0_i32_0 = arith.constant 0 : i32
    %c0_i32_1 = arith.constant 0 : i32
    return %c0_i32, %c0_i32_0 : i32, i32
  }
  func.func @transform_5(%arg0: i32) -> (i32, i32) {
    %c0_i32 = arith.constant 0 : i32
    %c0_i32_0 = arith.constant 0 : i32
    %c0_i32_1 = arith.constant 0 : i32
    return %c0_i32, %c0_i32_0 : i32, i32
  }
  func.func @transform_6(%arg0: i32) -> (i32, i32) {
    %c0_i32 = arith.constant 0 : i32
    %c0_i32_0 = arith.constant 0 : i32
    %c0_i32_1 = arith.constant 0 : i32
    return %c0_i32, %c0_i32_0 : i32, i32
  }
  func.func @transform_7(%arg0: i32) -> (i32, i32) {
    %c0_i32 = arith.constant 0 : i32
    %c0_i32_0 = arith.constant 0 : i32
    return %arg0, %c0_i32 : i32, i32
  }
}

</mosaic_0001>

<bundles_post_ra>
// kernel: _lambda_.1
= control target key start
LH: loop header
LB: loop body
LE: loop exit
PB: predicated region body
PF: predicated region fallthrough
CT: control target
= control target key end

     0   :  { %12 = vsyncpa [#allocation3], 0  ;;  %s829_s0 = inlined_call_operand.vmem [shape: bf16[8,128], index: 0, kind: input, shape index: {}]   ;;  %s830_s1 = inlined_call_operand.hbm [shape: bf16[128,128], index: 1, kind: input, shape index: {}]   ;;  %s831_s2 = inlined_call_operand.vmem [shape: f32[1,128], index: 2, kind: input, shape index: {}]   ;;  %s832_s3 = inlined_call_operand.hbm [shape: bf16[128,128], index: 3, kind: input, shape index: {}]   ;;  %s833_s4 = inlined_call_operand.vmem [shape: f32[1,128], index: 4, kind: input, shape index: {}]   ;;  %s834_s5 = inlined_call_operand.hbm [shape: bf16[128,128], index: 5, kind: input, shape index: {}]   ;;  %s835_s6 = inlined_call_operand.vmem [shape: f32[1,128], index: 6, kind: input, shape index: {}]   ;;  %s836_s7 = inlined_call_operand.hbm [shape: f32[8,128], index: 7, kind: output, shape index: {}]  }
   0x1   :  { %13 = vsyncpa [#allocation6], 0 }
   0x2   :  { %14 = vsyncpa [#allocation4], 0  ;;  %s675_s24 = smov [#allocation5]   ;;  %s676_s26 = smov [#allocation2]  }
   0x3   :  { %s36_s25 = sshll.u32 %s675_s24, 4  ;;  %s22_s27 = sshll.u32 %s676_s26, 4  ;;  %s37_s25 = int_to_ptr.vmem [resolvable:$true] %s36_s25  ;;  %s723_s27 = int_to_ptr.vmem [resolvable:$true] %s22_s27 }
   0x4   :  { %s581_s30 = scalar_lea.hbm %s832_s3, 1024 }
   0x5   :  { %p582_p0 = scmp.ne.s32.totalorder %s832_s3, %s581_s30  ;;  %p585_p1 = scmp.lt.u32.totalorder %s581_s30, %s832_s3 }
   0x7   :  { %p587_p2 = pnand %p585_p1, %p582_p0 }
   0x9   :  { %590 = shalt.err (!%p587_p2)
}
   0xa   :  { %s591_s12 = scalar_lea.vmem %s37_s25, 1024  ;;  %p596_p4 = scmp.lt.s32.totalorder %s37_s25, %s37_s25 }
   0xb   :  { %p592_p3 = scmp.ne.s32.totalorder %s37_s25, %s591_s12  ;;  %p597_p5 = scmp.lt.s32.totalorder %s591_s12, %s591_s12 }
   0xd   :  { %p598_p6 = por %p597_p5, %p596_p4 }
   0xf   :  { %p599_p7 = pnand %p598_p6, %p592_p3 }
  0x11   :  { %602 = shalt.err (!%p599_p7)
}
  0x12   :  { %s677_s13 = smov 64   ;;  %s678_s14 = smov 4  }
  0x13   :  { %42 = dma.hbm_to_vmem [thread:$0]  %s832_s3, 1024, %s37_s25, [#allocation6], %s677_s13, %s677_s13, %s678_s14  }
  0x14   :  { %s603_s19 = scalar_lea.hbm %s830_s1, 1024 }
  0x15   :  { %p604_p8 = scmp.ne.s32.totalorder %s830_s1, %s603_s19  ;;  %p607_p9 = scmp.lt.u32.totalorder %s603_s19, %s830_s1 }
  0x17   :  { %p609_p10 = pnand %p607_p9, %p604_p8 }
  0x19   :  { %612 = shalt.err (!%p609_p10)
}
  0x1a   :  { %s613_s24 = scalar_lea.vmem %s723_s27, 1024  ;;  %p618_p12 = scmp.lt.s32.totalorder %s723_s27, %s723_s27 }
  0x1b   :  { %p614_p11 = scmp.ne.s32.totalorder %s723_s27, %s613_s24  ;;  %p619_p13 = scmp.lt.s32.totalorder %s613_s24, %s613_s24 }
  0x1d   :  { %p620_p0 = por %p619_p13, %p618_p12 }
  0x1f   :  { %p621_p1 = pnand %p620_p0, %p614_p11 }
  0x21   :  { %624 = shalt.err (!%p621_p1)
}
  0x22   :  { %28 = dma.hbm_to_vmem [thread:$0]  %s830_s1, 1024, %s723_s27, [#allocation3], %s677_s13, %s677_s13, %s678_s14  }
  0x23   :  { %s679_s26 = smov [#allocation7]   ;;  %s625_s8 = scalar_lea.hbm %s834_s5, 1024 }
  0x24   :  { %s50_s28 = sshll.u32 %s679_s26, 4  ;;  %p626_p2 = scmp.ne.s32.totalorder %s834_s5, %s625_s8  ;;  %s51_s28 = int_to_ptr.vmem [resolvable:$true] %s50_s28 }
  0x25   :  { %p629_p3 = scmp.lt.u32.totalorder %s625_s8, %s834_s5 }
  0x27   :  { %p631_p4 = pnand %p629_p3, %p626_p2 }
  0x29   :  { %634 = shalt.err (!%p631_p4)
}
  0x2a   :  { %s635_s15 = scalar_lea.vmem %s51_s28, 1024  ;;  %p640_p6 = scmp.lt.s32.totalorder %s51_s28, %s51_s28 }
  0x2b   :  { %p636_p5 = scmp.ne.s32.totalorder %s51_s28, %s635_s15  ;;  %p641_p7 = scmp.lt.s32.totalorder %s635_s15, %s635_s15 }
  0x2d   :  { %p642_p8 = por %p641_p7, %p640_p6 }
  0x2f   :  { %p643_p9 = pnand %p642_p8, %p636_p5 }
  0x31   :  { %646 = shalt.err (!%p643_p9)
}
  0x32   :  { %56 = dma.hbm_to_vmem [thread:$0]  %s834_s5, 1024, %s51_s28, [#allocation6], %s677_s13, %s677_s13, %s678_s14  }
  0x33   :  { %669 = dma.done.wait [#allocation3], 1024  }
  0x34   :  { %670 = vsyncadd [#allocation3], 4294966272 }
  0x35   :  { %671 = dma.done.wait [#allocation6], 2048  }
  0x36   :  { %672 = vsyncadd [#allocation6], 4294965248  ;;  %v680_v0 = vmov 0.0   ;;  %vm681_vm0 = vmmov 0   ;;  %v553_v1 = vld [vmem:[#allocation2] sm:$0xff]   ;;  %v554_v2 = vld [vmem:[#allocation2 + $0x8] sm:$0xff]  }
  0x37   :  { %485 = vmatprep.subr.bf16.mxu0 %v680_v0  ;;  %501 = vmatprep.mubr.msk.bf16.mxu0 %vm681_vm0, %v680_v0  ;;  %v555_v3 = vld [vmem:[#allocation2 + $0x10] sm:$0xff]   ;;  %v561_v4 = vld [vmem:[#allocation5] sm:$0xff]   ;;  %v556_v5 = vld [vmem:[#allocation2 + $0x18] sm:$0xff]  }
  0x38   :  { %505 = vmatprep.subr.bf16.mxu1 %v680_v0  ;;  %521 = vmatprep.mubr.msk.bf16.mxu1 %vm681_vm0, %v680_v0  ;;  %v562_v6 = vld [vmem:[#allocation5 + $0x8] sm:$0xff]   ;;  %v557_v7 = vld [vmem:[#allocation2 + $0x20] sm:$0xff]   ;;  %v563_v8 = vld [vmem:[#allocation5 + $0x10] sm:$0xff]  }
  0x39   :  { %486 = vmatpush3.bf16.msra.mxu0 %v553_v1  ;;  %506 = vmatpush3.bf16.msra.mxu1 %v561_v4  ;;  %v558_v9 = vld [vmem:[#allocation2 + $0x28] sm:$0xff]   ;;  %v564_v10 = vld [vmem:[#allocation5 + $0x18] sm:$0xff]   ;;  %v559_v11 = vld [vmem:[#allocation2 + $0x30] sm:$0xff]  }
  0x3a   :  { %487 = vmatprep.subr.bf16.mxu0 %v680_v0  ;;  %507 = vmatprep.subr.bf16.mxu1 %v680_v0  ;;  %v565_v12 = vld [vmem:[#allocation5 + $0x20] sm:$0xff]   ;;  %v560_v13 = vld [vmem:[#allocation2 + $0x38] sm:$0xff]   ;;  %v566_v14 = vld [vmem:[#allocation5 + $0x28] sm:$0xff]  }
  0x3b   :  { %v69_v15 = vld [vmem:[%s829_s0] sm:$0xf]  ;;  %v567_v16 = vld [vmem:[#allocation5 + $0x30] sm:$0xff]   ;;  %v568_v17 = vld [vmem:[#allocation5 + $0x38] sm:$0xff]  }
  0x3c   :  { %v569_v18 = vld [vmem:[#allocation7] sm:$0xff]   ;;  %v570_v19 = vld [vmem:[#allocation7 + $0x8] sm:$0xff]   ;;  %v571_v20 = vld [vmem:[#allocation7 + $0x10] sm:$0xff]  }
  0x3d   :  { %488 = vmatpush3.bf16.msra.mxu0 %v554_v2  ;;  %508 = vmatpush3.bf16.msra.mxu1 %v562_v6  ;;  %v572_v21 = vld [vmem:[#allocation7 + $0x18] sm:$0xff]   ;;  %v573_v22 = vld [vmem:[#allocation7 + $0x20] sm:$0xff]   ;;  %v574_v23 = vld [vmem:[#allocation7 + $0x28] sm:$0xff]  }
  0x3e   :  { %489 = vmatprep.subr.bf16.mxu0 %v680_v0  ;;  %509 = vmatprep.subr.bf16.mxu1 %v680_v0  ;;  %v430_v24 = vld [vmem:[%s831_s2] ss:$0 sm:$0xff]  ;;  %v575_v32 = vld [vmem:[#allocation7 + $0x30] sm:$0xff]   ;;  %v576_v33 = vld [vmem:[#allocation7 + $0x38] sm:$0xff]  }
  0x3f   :  { %v439_v34 = vld [vmem:[%s833_s4] ss:$0 sm:$0xff]  ;;  %s682_s4 = smov [#allocation8]  }
  0x40   :  { %v448_v42 = vld [vmem:[%s835_s6] ss:$0 sm:$0xff]  ;;  %s420_s19 = sshll.u32 %s682_s4, 4  ;;  %s421_s19 = int_to_ptr.vmem [resolvable:$true] %s420_s19 }
  0x41   :  { %490 = vmatpush3.bf16.msra.mxu0 %v555_v3  ;;  %510 = vmatpush3.bf16.msra.mxu1 %v563_v8  ;;  %s647_s20 = scalar_lea.vmem %s421_s19, 128  ;;  %p652_p11 = scmp.lt.s32.totalorder %s421_s19, %s421_s19 }
  0x42   :  { %491 = vmatprep.subr.bf16.mxu0 %v680_v0  ;;  %511 = vmatprep.subr.bf16.mxu1 %v680_v0  ;;  %p648_p10 = scmp.ne.s32.totalorder %s421_s19, %s647_s20  ;;  %p653_p12 = scmp.lt.s32.totalorder %s647_s20, %s647_s20 }
  0x44   :  { %p654_p13 = por %p653_p12, %p652_p11 }
  0x45   :  { %492 = vmatpush3.bf16.msra.mxu0 %v556_v5  ;;  %512 = vmatpush3.bf16.msra.mxu1 %v564_v10 }
  0x46   :  { %493 = vmatprep.subr.bf16.mxu0 %v680_v0  ;;  %513 = vmatprep.subr.bf16.mxu1 %v680_v0  ;;  %p655_p0 = pnand %p654_p13, %p648_p10 }
  0x49   :  { %494 = vmatpush3.bf16.msra.mxu0 %v557_v7  ;;  %514 = vmatpush3.bf16.msra.mxu1 %v565_v12 }
  0x4a   :  { %495 = vmatprep.subr.bf16.mxu0 %v680_v0  ;;  %515 = vmatprep.subr.bf16.mxu1 %v680_v0 }
  0x4d   :  { %496 = vmatpush3.bf16.msra.mxu0 %v558_v9  ;;  %516 = vmatpush3.bf16.msra.mxu1 %v566_v14 }
  0x4e   :  { %497 = vmatprep.subr.bf16.mxu0 %v680_v0  ;;  %517 = vmatprep.subr.bf16.mxu1 %v680_v0 }
  0x51   :  { %498 = vmatpush3.bf16.msra.mxu0 %v559_v11  ;;  %518 = vmatpush3.bf16.msra.mxu1 %v567_v16 }
  0x52   :  { %499 = vmatprep.subr.bf16.mxu0 %v680_v0  ;;  %519 = vmatprep.subr.bf16.mxu1 %v680_v0 }
  0x55   :  { %500 = vmatpush3.bf16.msra.mxu0 %v560_v13  ;;  %520 = vmatpush3.bf16.msra.mxu1 %v568_v17 }
  0x56   :  { %525 = vmatprep.subr.bf16.mxu0 %v680_v0 }
  0x58   :  { %502 = vmatmul.mubr.bf16.vlgmr.msra.gmra.mrb[0].mxu0 %v69_v15 }
  0x59   :  { %541 = vmatprep.mubr.msk.bf16.mxu0 %vm681_vm0, %v680_v0  ;;  %526 = vmatpush3.bf16.msra.mxu0 %v569_v18 }
  0x5a   :  { %527 = vmatprep.subr.bf16.mxu0 %v680_v0 }
  0x5d   :  { %528 = vmatpush3.bf16.msra.mxu0 %v570_v19 }
  0x5e   :  { %529 = vmatprep.subr.bf16.mxu0 %v680_v0 }
  0x61   :  { %530 = vmatpush3.bf16.msra.mxu0 %v571_v20 }
  0x62   :  { %531 = vmatprep.subr.bf16.mxu0 %v680_v0 }
  0x65   :  { %532 = vmatpush3.bf16.msra.mxu0 %v572_v21 }
  0x66   :  { %533 = vmatprep.subr.bf16.mxu0 %v680_v0 }
  0x69   :  { %534 = vmatpush3.bf16.msra.mxu0 %v573_v22 }
  0x6a   :  { %535 = vmatprep.subr.bf16.mxu0 %v680_v0 }
  0x6d   :  { %536 = vmatpush3.bf16.msra.mxu0 %v574_v23 }
  0x6e   :  { %537 = vmatprep.subr.bf16.mxu0 %v680_v0 }
  0x71   :  { %538 = vmatpush3.bf16.msra.mxu0 %v575_v32 }
  0x72   :  { %539 = vmatprep.subr.bf16.mxu0 %v680_v0 }
  0x75   :  { %540 = vmatpush3.bf16.msra.mxu0 %v576_v33 }
 0x12b   :  { %v175_v25 = vpop.f32.mrb[0].mxu0 }
 0x12c   :  { %v176_v26 = vadd.f32 %v430_v24, %v175_v25  ;;  %v503_v27 = vpop.f32.mrb[1].mxu0 }
 0x12d   :  { %v178_v28 = vpop.f32.mrb[2].mxu0 }
 0x12e   :  { %v181_v29 = vmax.f32 %v176_v26, 0.0  ;;  %v504_v30 = vpop.f32.mrb[3].mxu0 }
 0x130   :  { %v182_v31 = vpack.c.bf16 %v181_v29, %v181_v29 }
 0x132   :  { %522 = vmatmul.mubr.bf16.vlgmr.msra.gmra.mrb[0].mxu1 %v182_v31 }
 0x205   :  { %v288_v35 = vpop.f32.mrb[0].mxu1 }
 0x206   :  { %v289_v36 = vadd.f32 %v439_v34, %v288_v35  ;;  %v523_v37 = vpop.f32.mrb[1].mxu1 }
 0x207   :  { %v291_v38 = vpop.f32.mrb[2].mxu1 }
 0x208   :  { %v294_v39 = vmax.f32 %v289_v36, 0.0  ;;  %v524_v40 = vpop.f32.mrb[3].mxu1 }
 0x20a   :  { %v295_v41 = vpack.c.bf16 %v294_v39, %v294_v39 }
 0x20c   :  { %542 = vmatmul.mubr.bf16.vlgmr.msra.gmra.mrb[4].mxu0 %v295_v41 }
 0x2df   :  { %v401_v43 = vpop.f32.mrb[4].mxu0 }
 0x2e0   :  { %v402_v44 = vadd.f32 %v448_v42, %v401_v43  ;;  %v543_v45 = vpop.f32.mrb[5].mxu0 }
 0x2e1   :  { %v404_v46 = vpop.f32.mrb[6].mxu0 }
 0x2e2   :  { %v457_v47 = vmul.f32 -1.442695, %v402_v44  ;;  %v544_v48 = vpop.f32.mrb[7].mxu0 }
 0x2e4   :  { %577 = vpow2.f32 %v457_v47 }
 0x2ee   :  { %v578_v49 = vpop.eup %577 }
 0x2ef   :  { %v410_v50 = vadd.f32 1.0, %v578_v49 }
 0x2f1   :  { %579 = vrcp.f32 %v410_v50 }
 0x2fb   :  { %v580_v51 = vpop.eup %579 }
 0x2fc   :  { %413 = vst [vmem:[#allocation8] sm:$0xff] %v580_v51 }
 0x2fd   :  { %658 = shalt.err (!%p655_p0)
}
 0x2fe   :  { %s659_s22 = scalar_lea.hbm %s836_s7, 128 }
 0x2ff   :  { %p660_p1 = scmp.ne.s32.totalorder %s836_s7, %s659_s22  ;;  %p663_p2 = scmp.lt.u32.totalorder %s659_s22, %s836_s7 }
 0x301   :  { %p665_p3 = pnand %p663_p2, %p660_p1 }
 0x303   :  { %668 = shalt.err (!%p665_p3)
}
 0x304   :  { %423 = dma.vmem_to_hbm [thread:$0]  %s421_s19, 128, %s836_s7, [#allocation4]  }
 0x305   :  { %673 = dma.done.wait [#allocation4], 128  }
 0x306   :  { %674 = vsyncadd [#allocation4], 4294967168 }
 0x307   :  { %427 = vsyncpa [#allocation3], 1 }
 0x308   :  { %428 = vsyncpa [#allocation6], 1 }
 0x309   :  { %429 = vsyncpa [#allocation4], 1 }

</bundles_post_ra>
